<compile_context>
chip_gen: v7x
topology: tpu7x:2x2x1
jax: 0.10.0
libtpu: 0.0.40
codegen_flags: <defaults>
</compile_context>

<pallas_src>
import jax
import jax.numpy as jnp
from jax.experimental import pallas as pl
from jax.experimental.pallas import tpu as pltpu

LANE = 128  # TPU lane width; feature dims are zero-padded to this IN-REGISTER.
# TODO(synk): on v6e/v7x with 128 < neurons_per_layer <= 256 a 256-wide pad
# target would fill the 2x256x256 MXU better; 128 is optimal for the demo
# widths and for v5e.


def _ann_kernel(x_ref, w_ref, b_ref, o_ref):
    """One batch tile through the whole MLP.

    x_ref : (TILE_B, F)        f32 input features, true width (lane-dense DMA)
    w_ref : (L, LANE, LANE)    bf16/f32 packed zero-padded weights (VMEM-resident)
    b_ref : (L, 1, LANE)       f32 packed zero-padded biases      (VMEM-resident)
    o_ref : (TILE_B, OUT)      f32 output, true width
    """
    num_layers = w_ref.shape[0]          # static
    feat = x_ref.shape[1]                # static
    out_size = o_ref.shape[1]            # static
    w_dtype = w_ref.dtype                # bf16 on the perf path, f32 for tests

    x = x_ref[...]                                      # (tile, F) f32
    if feat < LANE:
        # Lane-pad in-register; padded lanes hit zero weight rows -> exact 0s.
        x = jnp.pad(x, ((0, 0), (0, LANE - feat)))
    h = x.astype(w_dtype)                               # MXU-native operand

    # All layers except the last: affine + ReLU (statically unrolled).
    # Accumulate in f32 (preferred_element_type); bias add + ReLU on the f32
    # accumulator; down-cast only when feeding the next matmul.
    for l in range(num_layers - 1):
        acc = jnp.dot(h, w_ref[l], preferred_element_type=jnp.float32) + b_ref[l]
        h = jnp.maximum(acc, 0.0).astype(w_dtype)

    # Output layer: affine only; store just the true output lanes.
    acc = (
        jnp.dot(h, w_ref[num_layers - 1], preferred_element_type=jnp.float32)
        + b_ref[num_layers - 1]
    )
    o_ref[...] = acc[:, :out_size].astype(o_ref.dtype)


def _round_up(n, m):
    return ((n + m - 1) // m) * m


def pack_params(params, dtype=jnp.bfloat16):
    """Pack flat [W0, b0, W1, b1, ...] (true sizes, W as (in, out), b as (1, out))
    into one zero-padded (L, LANE, LANE) weight tensor (cast to `dtype`, bf16 by
    default for the MXU) and one (L, 1, LANE) f32 bias tensor. Do this once and
    reuse the packed arrays across forward calls."""
    ws, bs = params[0::2], params[1::2]
    for w in ws:
        assert w.shape[0] <= LANE and w.shape[1] <= LANE, (
            "layer width > 128 not supported here")
    wp = [
        jnp.pad(w.astype(dtype), ((0, LANE - w.shape[0]), (0, LANE - w.shape[1])))
        for w in ws
    ]
    bp = [jnp.pad(b.astype(jnp.float32), ((0, 0), (0, LANE - b.shape[1]))) for b in bs]
    return jnp.stack(wp), jnp.stack(bp)


def ann_forward(x, w_packed, b_packed, out_size, tile_b=4096, min_tiles=2):
    """x: (B, input_size) f32. Returns (B, out_size) f32."""
    B, F = x.shape
    assert F <= LANE and out_size <= LANE

    # Even batch tiling:
    #  * tile_b is an upper bound on rows per grid step (rounded to sublane 8),
    #  * num_tiles >= min_tiles (=2) so v7x's second TensorCore gets work,
    #  * rows are split evenly so padding waste is < 8 rows per tile.
    tile_b = _round_up(max(tile_b, 8), 8)
    num_tiles = max(-(-B // tile_b), min_tiles)
    tile = _round_up(-(-B // num_tiles), 8)
    padded_b = tile * num_tiles

    xp = x.astype(jnp.float32)
    if padded_b > B:
        xp = jnp.pad(xp, ((0, padded_b - B), (0, 0)))  # batch rows only; lanes stay narrow

    num_layers = int(w_packed.shape[0])
    cost = pl.CostEstimate(
        flops=2 * padded_b * LANE * LANE * num_layers,
        transcendentals=0,
        bytes_accessed=(
            padded_b * F * 4                                 # x stream in
            + padded_b * out_size * 4                        # output stream out
            + int(w_packed.size) * w_packed.dtype.itemsize   # resident weights (once)
            + int(b_packed.size) * 4                         # resident biases (once)
        ),
    )

    out = pl.pallas_call(
        _ann_kernel,
        out_shape=jax.ShapeDtypeStruct((padded_b, out_size), jnp.float32),
        grid=(num_tiles,),
        in_specs=[
            # batch-tiled activations at TRUE feature width (last dim == full array dim)
            pl.BlockSpec((tile, F), lambda i: (i, 0)),
            # packed weights / biases: constant block index -> VMEM-resident, DMA'd once
            pl.BlockSpec(w_packed.shape, lambda i: (0, 0, 0)),
            pl.BlockSpec(b_packed.shape, lambda i: (0, 0, 0)),
        ],
        out_specs=pl.BlockSpec((tile, out_size), lambda i: (i, 0)),
        compiler_params=pltpu.CompilerParams(
            dimension_semantics=("parallel",),  # megacore-shardable batch axis
        ),
        cost_estimate=cost,
    )(xp, w_packed, b_packed)

    return out[:B, :]


def init_params(key, input_size, output_size, num_hidden_layers, neurons_per_layer):
    """Deterministic synthetic parameter init (shapes follow the torch module).
    W is stored as (in_features, out_features) -- transpose of torch Linear."""
    sizes = (
        [(input_size, neurons_per_layer)]
        + [(neurons_per_layer, neurons_per_layer)] * (num_hidden_layers - 1)
        + [(neurons_per_layer, output_size)]
    )
    params = []
    for fan_in, fan_out in sizes:
        key, kw, kb = jax.random.split(key, 3)
        scale = 1.0 / jnp.sqrt(jnp.float32(fan_in))
        w = jax.random.uniform(
            kw, (fan_in, fan_out), jnp.float32, minval=-scale, maxval=scale
        )
        b = jax.random.uniform(
            kb, (1, fan_out), jnp.float32, minval=-scale, maxval=scale
        )
        params += [w, b]
    return params


def ann_reference(x, params, num_hidden_layers):
    """Plain-JAX reference mirroring the torch forward (unpadded f32 params)."""
    h = jnp.maximum(x @ params[0] + params[1], 0.0)
    for i in range(num_hidden_layers - 1):
        h = jnp.maximum(h @ params[2 + 2 * i] + params[3 + 2 * i], 0.0)
    return h @ params[-2] + params[-1]


if __name__ == "__main__":
    # Config analogous to the torch module's config dict (small demo shapes).
    config = dict(
        input_size=16,
        output_size=8,
        num_hidden_layers=3,  # -> input layer + 2 hidden layers + output layer
        neurons_per_layer=32,
    )
    batch = 8

    key = jax.random.PRNGKey(0)
    key, kx = jax.random.split(key)
    x = jax.random.normal(kx, (batch, config["input_size"]), jnp.float32)

    params = init_params(
        key,
        config["input_size"],
        config["output_size"],
        config["num_hidden_layers"],
        config["neurons_per_layer"],
    )
    ref = ann_reference(x, params, config["num_hidden_layers"])

    # --- exact-precision path (f32 weights): tight correctness check ---
    w_f32, b_f32 = pack_params(params, dtype=jnp.float32)
    out_f32 = jax.block_until_ready(
        ann_forward(x, w_f32, b_f32, config["output_size"])
    )
    assert out_f32.shape == (batch, config["output_size"])
    assert jnp.allclose(out_f32, ref, atol=1e-5, rtol=1e-5), "f32 mismatch vs reference"

    # --- performance path (bf16 weights / MXU feed): loose check ---
    w_bf16, b_bf16 = pack_params(params, dtype=jnp.bfloat16)
    out_bf16 = jax.block_until_ready(
        ann_forward(x, w_bf16, b_bf16, config["output_size"])
    )
    assert out_bf16.shape == (batch, config["output_size"])
    assert jnp.allclose(out_bf16, ref, atol=5e-2, rtol=5e-2), "bf16 mismatch vs reference"

    print("KERNEL_OK")
</pallas_src>

<mosaic_0001>
module attributes {stable_mosaic.version = 11 : i64} {
  func.func @_ann_kernel(%arg0: i32, %arg1: memref<8x16xf32, #tpu.memory_space<vmem>>, %arg2: memref<4x128x128xf32, #tpu.memory_space<vmem>>, %arg3: memref<4x1x128xf32, #tpu.memory_space<vmem>>, %arg4: memref<8x8xf32, #tpu.memory_space<vmem>>) attributes {dimension_semantics = [#tpu.dimension_semantics<parallel>], iteration_bounds = array<i64: 2>, scalar_prefetch = 0 : i64, scratch_operands = 0 : i64, tpu.core_type = #tpu.core_type<tc>, window_params = [{transform_indices = @transform_0, window_bounds = array<i64: 8, 16>}, {pipeline_mode = #tpu.pipeline_mode<synchronous>, transform_indices = @transform_1, window_bounds = array<i64: 4, 128, 128>}, {pipeline_mode = #tpu.pipeline_mode<synchronous>, transform_indices = @transform_2, window_bounds = array<i64: 4, 1, 128>}, {transform_indices = @transform_3, window_bounds = array<i64: 8, 8>}]} {
    %c0 = arith.constant 0 : index
    %c0_0 = arith.constant 0 : index
    %0 = vector.load %arg1[%c0, %c0_0] : memref<8x16xf32, #tpu.memory_space<vmem>>, vector<8x16xf32>
    %c0_i32 = arith.constant 0 : i32
    %1 = arith.sitofp %c0_i32 : i32 to f32
    %2 = vector.broadcast %1 : f32 to vector<8x112xf32>
    %3 = tpu.concatenate %0, %2 in 1 : vector<8x16xf32>, vector<8x112xf32> -> vector<8x128xf32>
    %c0_1 = arith.constant 0 : index
    %c0_2 = arith.constant 0 : index
    %c0_3 = arith.constant 0 : index
    %4 = vector.load %arg2[%c0_1, %c0_2, %c0_3] : memref<4x128x128xf32, #tpu.memory_space<vmem>>, vector<1x128x128xf32>
    %5 = vector.shape_cast %4 : vector<1x128x128xf32> to vector<128x128xf32>
    %cst = arith.constant dense<0.000000e+00> : vector<8x128xf32>
    %6 = tpu.matmul %3, %5, %cst {dimension_numbers = #tpu.dot_dimension_numbers<[1], [0], [0], [1], [0, 0, 1, 1], [], []>} : vector<8x128xf32>, vector<128x128xf32>, vector<8x128xf32> -> vector<8x128xf32>
    %c0_4 = arith.constant 0 : index
    %c0_5 = arith.constant 0 : index
    %c0_6 = arith.constant 0 : index
    %7 = vector.load %arg3[%c0_4, %c0_5, %c0_6] : memref<4x1x128xf32, #tpu.memory_space<vmem>>, vector<1x1x128xf32>
    %8 = vector.shape_cast %7 : vector<1x1x128xf32> to vector<1x128xf32>
    %9 = vector.broadcast %8 : vector<1x128xf32> to vector<8x128xf32>
    %10 = arith.addf %6, %9 : vector<8x128xf32>
    %cst_7 = arith.constant 0.000000e+00 : f32
    %11 = vector.broadcast %cst_7 : f32 to vector<8x128xf32>
    %12 = arith.maximumf %10, %11 : vector<8x128xf32>
    %c1 = arith.constant 1 : index
    %c0_8 = arith.constant 0 : index
    %c0_9 = arith.constant 0 : index
    %13 = vector.load %arg2[%c1, %c0_8, %c0_9] : memref<4x128x128xf32, #tpu.memory_space<vmem>>, vector<1x128x128xf32>
    %14 = vector.shape_cast %13 : vector<1x128x128xf32> to vector<128x128xf32>
    %cst_10 = arith.constant dense<0.000000e+00> : vector<8x128xf32>
    %15 = tpu.matmul %12, %14, %cst_10 {dimension_numbers = #tpu.dot_dimension_numbers<[1], [0], [0], [1], [0, 0, 1, 1], [], []>} : vector<8x128xf32>, vector<128x128xf32>, vector<8x128xf32> -> vector<8x128xf32>
    %c1_11 = arith.constant 1 : index
    %c0_12 = arith.constant 0 : index
    %c0_13 = arith.constant 0 : index
    %16 = vector.load %arg3[%c1_11, %c0_12, %c0_13] : memref<4x1x128xf32, #tpu.memory_space<vmem>>, vector<1x1x128xf32>
    %17 = vector.shape_cast %16 : vector<1x1x128xf32> to vector<1x128xf32>
    %18 = vector.broadcast %17 : vector<1x128xf32> to vector<8x128xf32>
    %19 = arith.addf %15, %18 : vector<8x128xf32>
    %cst_14 = arith.constant 0.000000e+00 : f32
    %20 = vector.broadcast %cst_14 : f32 to vector<8x128xf32>
    %21 = arith.maximumf %19, %20 : vector<8x128xf32>
    %c2 = arith.constant 2 : index
    %c0_15 = arith.constant 0 : index
    %c0_16 = arith.constant 0 : index
    %22 = vector.load %arg2[%c2, %c0_15, %c0_16] : memref<4x128x128xf32, #tpu.memory_space<vmem>>, vector<1x128x128xf32>
    %23 = vector.shape_cast %22 : vector<1x128x128xf32> to vector<128x128xf32>
    %cst_17 = arith.constant dense<0.000000e+00> : vector<8x128xf32>
    %24 = tpu.matmul %21, %23, %cst_17 {dimension_numbers = #tpu.dot_dimension_numbers<[1], [0], [0], [1], [0, 0, 1, 1], [], []>} : vector<8x128xf32>, vector<128x128xf32>, vector<8x128xf32> -> vector<8x128xf32>
    %c2_18 = arith.constant 2 : index
    %c0_19 = arith.constant 0 : index
    %c0_20 = arith.constant 0 : index
    %25 = vector.load %arg3[%c2_18, %c0_19, %c0_20] : memref<4x1x128xf32, #tpu.memory_space<vmem>>, vector<1x1x128xf32>
    %26 = vector.shape_cast %25 : vector<1x1x128xf32> to vector<1x128xf32>
    %27 = vector.broadcast %26 : vector<1x128xf32> to vector<8x128xf32>
    %28 = arith.addf %24, %27 : vector<8x128xf32>
    %cst_21 = arith.constant 0.000000e+00 : f32
    %29 = vector.broadcast %cst_21 : f32 to vector<8x128xf32>
    %30 = arith.maximumf %28, %29 : vector<8x128xf32>
    %c3 = arith.constant 3 : index
    %c0_22 = arith.constant 0 : index
    %c0_23 = arith.constant 0 : index
    %31 = vector.load %arg2[%c3, %c0_22, %c0_23] : memref<4x128x128xf32, #tpu.memory_space<vmem>>, vector<1x128x128xf32>
    %32 = vector.shape_cast %31 : vector<1x128x128xf32> to vector<128x128xf32>
    %cst_24 = arith.constant dense<0.000000e+00> : vector<8x128xf32>
    %33 = tpu.matmul %30, %32, %cst_24 {dimension_numbers = #tpu.dot_dimension_numbers<[1], [0], [0], [1], [0, 0, 1, 1], [], []>} : vector<8x128xf32>, vector<128x128xf32>, vector<8x128xf32> -> vector<8x128xf32>
    %c3_25 = arith.constant 3 : index
    %c0_26 = arith.constant 0 : index
    %c0_27 = arith.constant 0 : index
    %34 = vector.load %arg3[%c3_25, %c0_26, %c0_27] : memref<4x1x128xf32, #tpu.memory_space<vmem>>, vector<1x1x128xf32>
    %35 = vector.shape_cast %34 : vector<1x1x128xf32> to vector<1x128xf32>
    %36 = vector.broadcast %35 : vector<1x128xf32> to vector<8x128xf32>
    %37 = arith.addf %33, %36 : vector<8x128xf32>
    %38 = vector.extract_strided_slice %37 {offsets = [0, 0], sizes = [8, 8], strides = [1, 1]} : vector<8x128xf32> to vector<8x8xf32>
    %c0_28 = arith.constant 0 : index
    %c0_29 = arith.constant 0 : index
    %39 = vector.load %arg4[%c0_28, %c0_29] : memref<8x8xf32, #tpu.memory_space<vmem>>, vector<8x8xf32>
    tpu.vector_store %arg4[%c0_28, %c0_29], %38 {strides = array<i32>} : memref<8x8xf32, #tpu.memory_space<vmem>>, vector<8x8xf32>,
    return
  }
  func.func @transform_0(%arg0: i32) -> (i32, i32) {
    %c0_i32 = arith.constant 0 : i32
    %c0_i32_0 = arith.constant 0 : i32
    return %arg0, %c0_i32 : i32, i32
  }
  func.func @transform_1(%arg0: i32) -> (i32, i32, i32) {
    %c0_i32 = arith.constant 0 : i32
    %c0_i32_0 = arith.constant 0 : i32
    %c0_i32_1 = arith.constant 0 : i32
    %c0_i32_2 = arith.constant 0 : i32
    return %c0_i32, %c0_i32_0, %c0_i32_1 : i32, i32, i32
  }
  func.func @transform_2(%arg0: i32) -> (i32, i32, i32) {
    %c0_i32 = arith.constant 0 : i32
    %c0_i32_0 = arith.constant 0 : i32
    %c0_i32_1 = arith.constant 0 : i32
    %c0_i32_2 = arith.constant 0 : i32
    return %c0_i32, %c0_i32_0, %c0_i32_1 : i32, i32, i32
  }
  func.func @transform_3(%arg0: i32) -> (i32, i32) {
    %c0_i32 = arith.constant 0 : i32
    %c0_i32_0 = arith.constant 0 : i32
    return %arg0, %c0_i32 : i32, i32
  }
}

</mosaic_0001>

<bundles_post_ra>
// kernel: tpu_custom_call.1
= control target key start
LH: loop header
LB: loop body
LE: loop exit
PB: predicated region body
PF: predicated region fallthrough
CT: control target
= control target key end

     0   :  { %8 = vsyncpa [#allocation3], 0  ;;  %s1362_s0 = inlined_call_operand.hbm [shape: f32[16,16], index: 0, kind: input, shape index: {}]   ;;  %s1363_s1 = inlined_call_operand.hbm [shape: f32[4,128,128], index: 1, kind: input, shape index: {}]   ;;  %s1364_s2 = inlined_call_operand.vmem [shape: f32[4,1,128], index: 2, kind: input, shape index: {}]   ;;  %s1365_s3 = inlined_call_operand.vmem [shape: f32[16,8], index: 3, kind: output, shape index: {}]  }
   0x1   :  { %10 = vsyncpa [#allocation3 + $0x1], 0 }
   0x2   :  { %11 = vsyncpa [#allocation5], 0  ;;  %s1166_s12 = smov 0   ;;  %s1168_s13 = smov 0  }
   0x3   :  { %s1170_s14 = smov 0   ;;  %s1172_s15 = smov 0  }
   0x4 LB: > { %s1185_s16 = sadd.s32 4294967295, %s1137_s15   ;;  %p37_p0 = scmp.ne.s32.totalorder %s1129_s13, %s1125_s12  ;;  %s1137_s15 = sphi %s1172_s15, %s1380_s15   ;;  %s1133_s14 = sphi %s1170_s14, %s1379_s14   ;;  %s1129_s13 = sphi %s1168_s13, %s1378_s13   ;;  %s1125_s12 = sphi %s1166_s12, %s1377_s12  }
   0x5   : > { %p1366_p1 = scmp.eq.s32.totalorder %s1185_s16, 0  ;;  %p663_p2 = scmp.ge.s32.totalorder %s1137_s15, 1 }
   0x6   : > { %p116_p3 = scmp.lt.s32.totalorder %s1137_s15, 3  ;;  %s1139_s19 = smov [#allocation4]  }
   0x7   : > { %p1193_p4 = por %p1366_p1, %p37_p0  ;;  %s128_s20 = sshll.u32 %s1139_s19, 4  ;;  %s129_s20 = int_to_ptr.vmem [resolvable:$true] %s128_s20 }
   0x8   : > { %p1197_p5 = pnand %p663_p2, %p116_p3  ;;  %s1210_s22 = sadd.s32 1, %s1137_s15  }
   0x9   : > { %s1369_s17 = scalar_select %p1193_p4, 1, 0 }
   0xa   : > { %s1370_s18 = scalar_select %p1197_p5, 1, 0 }
   0xb   : > { %p992_p6 = pneg %p1197_p5  ;;  %s24_s23 = sadd.s32 1, %s1133_s14 }
   0xc   : > { %s21_s24 = ssub.s32 %s1137_s15, %s1210_s22  ;;  %s1041_s27 = scalar_lea.hbm %s1363_s1, 8192 }
   0xd   : > { %p1205_p7 = pnand %p992_p6, %p1366_p1  ;;  %p1042_p8 = scmp.ne.s32.totalorder %s1363_s1, %s1041_s27 }
   0xe   : > { %p1048_p12 = scmp.lt.u32.totalorder %s1041_s27, %s1363_s1 }
   0xf   : > { %p1043_p9 = pneg %p1205_p7 }
  0x11   : > { %p1044_p10 = pnand %p1043_p9, %p1042_p8 }
  0x13   : > { %p1045_p11 = pneg %p1044_p10 }
  0x15   : > { %p1050_p13 = pnand %p1048_p12, %p1045_p11 }
  0x17   : > { %1053 = shalt.err (!%p1050_p13)
}
  0x18   : > { %s1054_s5 = scalar_lea.vmem %s129_s20, 8192  ;;  %p1062_p6 = scmp.lt.s32.totalorder %s129_s20, %s129_s20 }
  0x19   : > { %p1055_p0 = scmp.ne.s32.totalorder %s129_s20, %s1054_s5  ;;  %p1063_p1 = scmp.lt.s32.totalorder %s1054_s5, %s1054_s5 }
  0x1b   : > { %p1057_p2 = pnand %p1055_p0, %p1043_p9  ;;  %p1064_p4 = por %p1063_p1, %p1062_p6 }
  0x1d   : > { %p1058_p3 = pneg %p1057_p2 }
  0x1f   : > { %p1065_p5 = pnand %p1064_p4, %p1058_p3 }
  0x21   : > { %1068 = shalt.err (!%p1065_p5)
}
  0x22   : > { %s1140_s6 = smov 128   ;;  %s1141_s7 = smov 8  }
  0x23   : > { %995 = dma.hbm_to_vmem [thread:$0]  (!%p1205_p7), %s1363_s1, 8192, %s129_s20, [#allocation5], %s1140_s6, %s1140_s6, %s1141_s7  }
  0x24   : > { %p22_p8 = scmp.eq.s32.totalorder %s21_s24, 0  ;;  %p31_p9 = scmp.ne.s32.totalorder %s1133_s14, %s1129_s13 }
  0x25   : > { %p32_p1 = scmp.eq.s32.totalorder %s1137_s15, 0  ;;  %p1001_p4 = scmp.lt.s32.totalorder %s1137_s15, 2 }
  0x26   : > { %s1236_s10 = scalar_select %p22_p8, %s1133_s14, %s24_s23  }
  0x27   : > { %p33_p5 = por %p32_p1, %p31_p9  ;;  %s145_s11 = sand.u32 1, %s1133_s14  }
  0x28   : > { %s666_s12 = sshll.u32 %s145_s11, 3  ;;  %s667_s19 = sshll.u32 %s1137_s15, 7 }
  0x29   : > { %s1243_s27 = scalar_lea.hbm %s1362_s0, %s667_s19  ;;  %s149_s20 = scalar_lea.vmem [#allocation2], %s666_s12 }
  0x2a   : > { %s156_s21 = sshll.u32 %s149_s20, 4  ;;  %p1247_p7 = pnand %p1001_p4, %p33_p5  ;;  %s1245_s21 = int_to_ptr.vmem [resolvable:$true] %s156_s21 }
  0x2b   : > { %s146_s15 = scalar_lea.sflag [#allocation3], %s145_s11  ;;  %s1069_s24 = scalar_lea.hbm %s1243_s27, 128 }
  0x2c   : > { %p1070_p10 = scmp.ne.s32.totalorder %s1243_s27, %s1069_s24  ;;  %p1071_p11 = pneg %p1247_p7 }
  0x2d   : > { %s1074_s30 = scalar_lea.hbm %s1362_s0, 256  ;;  %p1075_p0 = scmp.lt.u32.totalorder %s1243_s27, %s1362_s0 }
  0x2e   : > { %p1072_p12 = pnand %p1071_p11, %p1070_p10  ;;  %p1076_p2 = scmp.lt.u32.totalorder %s1074_s30, %s1069_s24 }
  0x2f   : > { %p1078_p6 = scmp.lt.u32.totalorder %s1069_s24, %s1243_s27 }
  0x30   : > { %p1073_p13 = pneg %p1072_p12  ;;  %p1077_p3 = por %p1076_p2, %p1075_p0 }
  0x32   : > { %p1079_p8 = por %p1078_p6, %p1077_p3 }
  0x34   : > { %p1080_p9 = pnand %p1079_p8, %p1073_p13 }
  0x36   : > { %1083 = shalt.err (!%p1080_p9)
}
  0x37   : > { %s1084_s6 = scalar_lea.vmem %s1245_s21, 128  ;;  %s1142_s7 = smov [#allocation2]  }
  0x38   : > { %p1085_p1 = scmp.ne.s32.totalorder %s1245_s21, %s1084_s6  ;;  %s1089_s8 = sshll.u32 %s1142_s7, 4  ;;  %s1090_s8 = int_to_ptr.vmem [resolvable:$false] %s1089_s8 }
  0x39   : > { %s1091_s9 = scalar_lea.vmem %s1090_s8, 256  ;;  %p1092_p10 = scmp.lt.s32.totalorder %s1245_s21, %s1090_s8 }
  0x3a   : > { %p1087_p4 = pnand %p1085_p1, %p1071_p11  ;;  %p1093_p12 = scmp.lt.s32.totalorder %s1091_s9, %s1084_s6 }
  0x3c   : > { %p1088_p5 = pneg %p1087_p4  ;;  %p1094_p0 = por %p1093_p12, %p1092_p10 }
  0x3e   : > { %p1095_p2 = pnand %p1094_p0, %p1088_p5 }
  0x40   : > { %1098 = shalt.err (!%p1095_p2)
}
  0x41   : > { %999 = dma.hbm_to_vmem [thread:$0]  (!%p1247_p7), %s1243_s27, 128, %s1245_s21, %s146_s15  }
  0x42   : > { %p1373_p13 = scmp.ne.s32.totalorder %s1370_s18, 0 }
  0x43   : > { %s167_s11 = sand.u32 (!%p1373_p13), 1, %s1129_s13   ;;  %p1374_p11 = scmp.ne.s32.totalorder (!%p1373_p13), %s1369_s17, 0 }
  0x44   : > { %165 = sbr.rel (%p1373_p13) target bundleno = 976 (0x3d0), region = 32  ;;  %s1279_s12 = sshll.u32 (!%p1373_p13), %s167_s11, 3 }
  0x45   : > { %s168_s19 = scalar_lea.sflag (!%p1373_p13), [#allocation3], %s167_s11  ;;  %s171_s25 = scalar_lea.vmem (!%p1373_p13), [#allocation2], %s1279_s12 }
  0x4b   : > { %1116 = dma.done.wait (%p1374_p11), %s168_s19, 128  }
  0x4c   : > { %1118 = vsyncadd (%p1374_p11), %s168_s19, 4294967168  ;;  %p1375_p3 = scmp.eq.s32.totalorder %s1185_s16, 0 }
  0x4e   : > { %1120 = dma.done.wait (%p1375_p3), [#allocation5], 8192   ;;  %p1376_p7 = pmov %p1375_p3 }
  0x4f   : > { %v1143_v0 = vmov 0.0|0.0   ;;  %vm1144_vm0 = vmmov 0   ;;  %v1145_v1 = vmov 0.0   ;;  %v204_v2 = vld [vmem:[#allocation4] sm:$0xff]  ;;  %v205_v3 = vld [vmem:[#allocation4 + $0x8] sm:$0xff]  ;;  %v206_v4 = vld [vmem:[#allocation4 + $0x10] sm:$0xff] }
  0x50   : > { %1122 = vsyncadd (%p1376_p7), [#allocation5], 4294959104  ;;  %890 = vmatprep.subr.bf16.mxu0 %v1143_v0  ;;  %782 = vmatprep.mubr.msk.f32.mxu0 %vm1144_vm0, %v1145_v1  ;;  %v891_v5 = vpack.c.bf16 %v205_v3, %v204_v2  ;;  %v207_v6 = vld [vmem:[#allocation4 + $0x18] sm:$0xff]  ;;  %v208_v8 = vld [vmem:[#allocation4 + $0x20] sm:$0xff]  ;;  %vm202_vm1 = vcmask 130048   ;;  %p197_p6 = scmp.lt.s32.totalorder %s1185_s16, 1 }
  0x51   : > { %914 = vmatprep.subr.bf16.mxu1 %v1143_v0  ;;  %817 = vmatprep.mubr.msk.f32.mxu1 %vm1144_vm0, %v1145_v1  ;;  %v894_v7 = vpack.c.bf16 %v207_v6, %v206_v4  ;;  %v209_v9 = vld [vmem:[#allocation4 + $0x28] sm:$0xff]  ;;  %v299_v10 = vld [vmem:[#allocation4 + $0x80] sm:$0xff]  ;;  %v301_v12 = vld [vmem:[#allocation4 + $0x90] sm:$0xff]  ;;  %vm585_vm2 = vcmask 64512  }
  0x52   : > { %892 = vmatpush3.bf16.msra.mxu0 %v891_v5  ;;  %v300_v11 = vld [vmem:[#allocation4 + $0x88] sm:$0xff]  ;;  %v302_v13 = vld [vmem:[#allocation4 + $0x98] sm:$0xff]  ;;  %v897_v14 = vpack.c.bf16 %v209_v9, %v208_v8  ;;  %v210_v16 = vld [vmem:[#allocation4 + $0x30] sm:$0xff]  ;;  %s1382_s16 = smov (!%p197_p6, %s1185_s16), 1 }
  0x53   : > { %893 = vmatprep.subr.bf16.mxu0 %v1143_v0  ;;  %v915_v15 = vpack.c.bf16 %v300_v11, %v299_v10  ;;  %v211_v17 = vld [vmem:[#allocation4 + $0x38] sm:$0xff]  ;;  %v918_v18 = vpack.c.bf16 %v302_v13, %v301_v12  ;;  %v303_v19 = vld [vmem:[#allocation4 + $0xa0] sm:$0xff]  ;;  %v304_v20 = vld [vmem:[#allocation4 + $0xa8] sm:$0xff]  ;;  %s671_s23 = sshll.u32 %s1382_s16, 3 }
  0x54   : > { %v900_v21 = vpack.c.bf16 %v211_v17, %v210_v16  ;;  %v212_v22 = vld [vmem:[#allocation4 + $0x40] sm:$0xff]  ;;  %v213_v23 = vld [vmem:[#allocation4 + $0x48] sm:$0xff]  ;;  %v921_v24 = vpack.c.bf16 %v304_v20, %v303_v19  ;;  %v305_v25 = vld [vmem:[#allocation4 + $0xb0] sm:$0xff]  ;;  %s200_s30 = scalar_lea.vmem %s1365_s3, %s671_s23 }
  0x55   : > { %916 = vmatpush3.bf16.msra.mxu1 %v915_v15  ;;  %v306_v26 = vld [vmem:[#allocation4 + $0xb8] sm:$0xff]  ;;  %v903_v27 = vpack.c.bf16 %v213_v23, %v212_v22  ;;  %v214_v28 = vld [vmem:[#allocation4 + $0x50] sm:$0xff]  ;;  %v307_v31 = vld [vmem:[#allocation4 + $0xc0] sm:$0xff] }
  0x56   : > { %895 = vmatpush3.bf16.msra.mxu0 %v894_v7  ;;  %917 = vmatprep.subr.bf16.mxu1 %v1143_v0  ;;  %v215_v29 = vld [vmem:[#allocation4 + $0x58] sm:$0xff]  ;;  %v924_v30 = vpack.c.bf16 %v306_v26, %v305_v25  ;;  %v308_v32 = vld [vmem:[#allocation4 + $0xc8] sm:$0xff]  ;;  %v216_v34 = vld [vmem:[#allocation4 + $0x60] sm:$0xff] }
  0x57   : > { %896 = vmatprep.subr.bf16.mxu0 %v1143_v0  ;;  %v906_v33 = vpack.c.bf16 %v215_v29, %v214_v28  ;;  %v217_v35 = vld [vmem:[#allocation4 + $0x68] sm:$0xff]  ;;  %v927_v36 = vpack.c.bf16 %v308_v32, %v307_v31  ;;  %v309_v37 = vld [vmem:[#allocation4 + $0xd0] sm:$0xff]  ;;  %v310_v38 = vld [vmem:[#allocation4 + $0xd8] sm:$0xff] }
  0x58   : > { %v909_v39 = vpack.c.bf16 %v217_v35, %v216_v34  ;;  %v218_v40 = vld [vmem:[#allocation4 + $0x70] sm:$0xff]  ;;  %v219_v41 = vld [vmem:[#allocation4 + $0x78] sm:$0xff]  ;;  %v930_v42 = vpack.c.bf16 %v310_v38, %v309_v37  ;;  %v311_v43 = vld [vmem:[#allocation4 + $0xe0] sm:$0xff] }
  0x59   : > { %919 = vmatpush3.bf16.msra.mxu1 %v918_v18  ;;  %v312_v44 = vld [vmem:[#allocation4 + $0xe8] sm:$0xff]  ;;  %v912_v45 = vpack.c.bf16 %v219_v41, %v218_v40  ;;  %v201_v47 = vld [vmem:[%s171_s25] sm:$0xff]  ;;  %v395_v51 = vld [vmem:[#allocation4 + $0x100] sm:$0xff] }
  0x5a   : > { %898 = vmatpush3.bf16.msra.mxu0 %v897_v14  ;;  %920 = vmatprep.subr.bf16.mxu1 %v1143_v0  ;;  %v933_v46 = vpack.c.bf16 %v312_v44, %v311_v43  ;;  %v313_v48 = vld [vmem:[#allocation4 + $0xf0] sm:$0xff]  ;;  %v314_v49 = vld [vmem:[#allocation4 + $0xf8] sm:$0xff]  ;;  %v396_v52 = vld [vmem:[#allocation4 + $0x108] sm:$0xff] }
  0x5b   : > { %899 = vmatprep.subr.bf16.mxu0 %v1143_v0  ;;  %v936_v50 = vpack.c.bf16 %v314_v49, %v313_v48  ;;  %v397_v53 = vld [vmem:[#allocation4 + $0x110] sm:$0xff]  ;;  %v939_v54 = vpack.c.bf16 %v396_v52, %v395_v51  ;;  %v398_v55 = vld [vmem:[#allocation4 + $0x118] sm:$0xff]  ;;  %v399_v57 = vld [vmem:[#allocation4 + $0x120] sm:$0xff] }
  0x5c   : > { %v942_v56 = vpack.c.bf16 %v398_v55, %v397_v53  ;;  %v400_v58 = vld [vmem:[#allocation4 + $0x128] sm:$0xff]  ;;  %v401_v60 = vld [vmem:[#allocation4 + $0x130] sm:$0xff]  ;;  %v402_v61 = vld [vmem:[#allocation4 + $0x138] sm:$0xff] }
  0x5d   : > { %922 = vmatpush3.bf16.msra.mxu1 %v921_v24  ;;  %v945_v59 = vpack.c.bf16 %v400_v58, %v399_v57  ;;  %v948_v62 = vpack.c.bf16 %v402_v61, %v401_v60  ;;  %v403_v63 = vld [vmem:[#allocation4 + $0x140] sm:$0xff]  ;;  %v404_v2 = vld [vmem:[#allocation4 + $0x148] sm:$0xff]  ;;  %v405_v4 = vld [vmem:[#allocation4 + $0x150] sm:$0xff] }
  0x5e   : > { %901 = vmatpush3.bf16.msra.mxu0 %v900_v21  ;;  %923 = vmatprep.subr.bf16.mxu1 %v1143_v0  ;;  %v951_v3 = vpack.c.bf16 %v404_v2, %v403_v63  ;;  %v406_v5 = vld [vmem:[#allocation4 + $0x158] sm:$0xff]  ;;  %v407_v7 = vld [vmem:[#allocation4 + $0x160] sm:$0xff]  ;;  %v408_v8 = vld [vmem:[#allocation4 + $0x168] sm:$0xff] }
  0x5f   : > { %902 = vmatprep.subr.bf16.mxu0 %v1143_v0  ;;  %v954_v6 = vpack.c.bf16 %v406_v5, %v405_v4  ;;  %v957_v9 = vpack.c.bf16 %v408_v8, %v407_v7  ;;  %v672_v10 = vld [vmem:[%s1364_s2] ss:$0 sm:$0xff]  ;;  %v409_v15 = vld [vmem:[#allocation4 + $0x170] sm:$0xff]  ;;  %v410_v16 = vld [vmem:[#allocation4 + $0x178] sm:$0xff] }
  0x60   : > { %v960_v17 = vpack.c.bf16 %v410_v16, %v409_v15  ;;  %v491_v18 = vld [vmem:[#allocation4 + $0x180] sm:$0xff]  ;;  %v492_v19 = vld [vmem:[#allocation4 + $0x188] sm:$0xff]  ;;  %v493_v20 = vld [vmem:[#allocation4 + $0x190] sm:$0xff] }
  0x61   : > { %925 = vmatpush3.bf16.msra.mxu1 %v924_v30  ;;  %v963_v21 = vpack.c.bf16 %v492_v19, %v491_v18  ;;  %v494_v22 = vld [vmem:[#allocation4 + $0x198] sm:$0xff]  ;;  %v495_v24 = vld [vmem:[#allocation4 + $0x1a0] sm:$0xff]  ;;  %v496_v25 = vld [vmem:[#allocation4 + $0x1a8] sm:$0xff] }
  0x62   : > { %904 = vmatpush3.bf16.msra.mxu0 %v903_v27  ;;  %926 = vmatprep.subr.bf16.mxu1 %v1143_v0  ;;  %v966_v23 = vpack.c.bf16 %v494_v22, %v493_v20  ;;  %v969_v26 = vpack.c.bf16 %v496_v25, %v495_v24  ;;  %v498_v27 = vld [vmem:[#allocation4 + $0x1b8] sm:$0xff]  ;;  %v499_v29 = vld [vmem:[#allocation4 + $0x1c0] sm:$0xff]  ;;  %v500_v30 = vld [vmem:[#allocation4 + $0x1c8] sm:$0xff] }
  0x63   : > { %905 = vmatprep.subr.bf16.mxu0 %v1143_v0  ;;  %v975_v31 = vpack.c.bf16 %v500_v30, %v499_v29  ;;  %v501_v32 = vld [vmem:[#allocation4 + $0x1d0] sm:$0xff]  ;;  %v503_v35 = vld [vmem:[#allocation4 + $0x1e0] sm:$0xff]  ;;  %v506_v44 = vld [vmem:[#allocation4 + $0x1f8] sm:$0xff] }
  0x64   : > { %v675_v38 = vld [vmem:[%s1364_s2 + $0x1] ss:$0 sm:$0xff]  ;;  %v505_v43 = vld [vmem:[#allocation4 + $0x1f0] sm:$0xff] }
  0x65   : > { %928 = vmatpush3.bf16.msra.mxu1 %v927_v36  ;;  %v504_v36 = vld [vmem:[#allocation4 + $0x1e8] sm:$0xff] }
  0x66   : > { %907 = vmatpush3.bf16.msra.mxu0 %v906_v33  ;;  %929 = vmatprep.subr.bf16.mxu1 %v1143_v0  ;;  %v502_v33 = vld [vmem:[#allocation4 + $0x1d8] sm:$0xff]  ;;  %v981_v37 = vpack.c.bf16 %v504_v36, %v503_v35 }
  0x67   : > { %908 = vmatprep.subr.bf16.mxu0 %v1143_v0  ;;  %v978_v34 = vpack.c.bf16 %v502_v33, %v501_v32 }
  0x69   : > { %931 = vmatpush3.bf16.msra.mxu1 %v930_v42 }
  0x6a   : > { %910 = vmatpush3.bf16.msra.mxu0 %v909_v39  ;;  %932 = vmatprep.subr.bf16.mxu1 %v1143_v0 }
  0x6b   : > { %911 = vmatprep.subr.bf16.mxu0 %v1143_v0 }
  0x6d   : > { %934 = vmatpush3.bf16.msra.mxu1 %v933_v46  ;;  %v677_v46 = vld [vmem:[%s1364_s2 + $0x2] ss:$0 sm:$0xff] }
  0x6e   : > { %913 = vmatpush3.bf16.msra.mxu0 %v912_v45  ;;  %935 = vmatprep.subr.bf16.mxu1 %v1143_v0  ;;  %v984_v45 = vpack.c.bf16 %v506_v44, %v505_v43 }
  0x6f   : > { %938 = vmatprep.subr.bf16.mxu0 %v1143_v0 }
  0x71   : > { %783 = vmatmul.mubr.msk.f32.vlgmr.msra.gmra.mrb[0].mxu0 %vm202_vm1, %v201_v47  ;;  %937 = vmatpush3.bf16.msra.mxu1 %v936_v50  ;;  %v679_v50 = vld [vmem:[%s1364_s2 + $0x3] ss:$0 sm:$0xff] }
  0x72   : > { %852 = vmatprep.mubr.msk.f32.mxu0 %vm1144_vm0, %v1145_v1  ;;  %962 = vmatprep.subr.bf16.mxu1 %v1143_v0 }
  0x73   : > { %940 = vmatpush3.bf16.msra.mxu0 %v939_v54 }
  0x74   : > { %941 = vmatprep.subr.bf16.mxu0 %v1143_v0 }
  0x77   : > { %943 = vmatpush3.bf16.msra.mxu0 %v942_v56 }
  0x78   : > { %944 = vmatprep.subr.bf16.mxu0 %v1143_v0 }
  0x7b   : > { %946 = vmatpush3.bf16.msra.mxu0 %v945_v59 }
  0x7c   : > { %947 = vmatprep.subr.bf16.mxu0 %v1143_v0 }
  0x7f   : > { %949 = vmatpush3.bf16.msra.mxu0 %v948_v62 }
  0x80   : > { %950 = vmatprep.subr.bf16.mxu0 %v1143_v0 }
  0x83   : > { %952 = vmatpush3.bf16.msra.mxu0 %v951_v3 }
  0x84   : > { %953 = vmatprep.subr.bf16.mxu0 %v1143_v0 }
  0x87   : > { %955 = vmatpush3.bf16.msra.mxu0 %v954_v6 }
  0x88   : > { %956 = vmatprep.subr.bf16.mxu0 %v1143_v0 }
  0x8b   : > { %958 = vmatpush3.bf16.msra.mxu0 %v957_v9 }
  0x8c   : > { %959 = vmatprep.subr.bf16.mxu0 %v1143_v0 }
  0x8f   : > { %961 = vmatpush3.bf16.msra.mxu0 %v960_v17 }
 0x144   : > { %v293_v11 = vpop.f32.mrb[0].mxu0 }
 0x145   : > { %v294_v12 = vadd.f32 %v672_v10, %v293_v11  ;;  %v784_v13 = vpop.f32.mrb[1].mxu0 }
 0x147   : > { %v297_v14 = vmax.f32 %v294_v12, 0.0 }
 0x149   : > { %818 = vmatmul.mubr.f32.vlgmr.msra.gmra.mrb[0].mxu1 %v297_v14 }
 0x14a   : > { %887 = vmatprep.mubr.msk.f32.mxu1 %vm1144_vm0, %v1145_v1  ;;  %964 = vmatpush3.bf16.msra.mxu1 %v963_v21  ;;  %v497_v1 = vld [vmem:[#allocation4 + $0x1b0] sm:$0xff] }
 0x14b   : > { %965 = vmatprep.subr.bf16.mxu1 %v1143_v0  ;;  %v972_v28 = vpack.c.bf16 %v498_v27, %v497_v1 }
 0x14e   : > { %967 = vmatpush3.bf16.msra.mxu1 %v966_v23 }
 0x14f   : > { %968 = vmatprep.subr.bf16.mxu1 %v1143_v0 }
 0x152   : > { %970 = vmatpush3.bf16.msra.mxu1 %v969_v26 }
 0x153   : > { %971 = vmatprep.subr.bf16.mxu1 %v1143_v0 }
 0x156   : > { %973 = vmatpush3.bf16.msra.mxu1 %v972_v28 }
 0x157   : > { %974 = vmatprep.subr.bf16.mxu1 %v1143_v0 }
 0x15a   : > { %976 = vmatpush3.bf16.msra.mxu1 %v975_v31 }
 0x15b   : > { %977 = vmatprep.subr.bf16.mxu1 %v1143_v0 }
 0x15e   : > { %979 = vmatpush3.bf16.msra.mxu1 %v978_v34 }
 0x15f   : > { %980 = vmatprep.subr.bf16.mxu1 %v1143_v0 }
 0x162   : > { %982 = vmatpush3.bf16.msra.mxu1 %v981_v37 }
 0x163   : > { %983 = vmatprep.subr.bf16.mxu1 %v1143_v0 }
 0x166   : > { %985 = vmatpush3.bf16.msra.mxu1 %v984_v45 }
 0x21c   : > { %v389_v39 = vpop.f32.mrb[0].mxu1 }
 0x21d   : > { %v390_v40 = vadd.f32 %v675_v38, %v389_v39  ;;  %v819_v41 = vpop.f32.mrb[1].mxu1 }
 0x21f   : > { %v393_v42 = vmax.f32 %v390_v40, 0.0 }
 0x221   : > { %853 = vmatmul.mubr.f32.vlgmr.msra.gmra.mrb[2].mxu0 %v393_v42 }
 0x2f4   : > { %v485_v0 = vpop.f32.mrb[2].mxu0 }
 0x2f5   : > { %v486_v47 = vadd.f32 %v677_v46, %v485_v0  ;;  %v854_v48 = vpop.f32.mrb[3].mxu0 }
 0x2f7   : > { %v489_v49 = vmax.f32 %v486_v47, 0.0 }
 0x2f9   : > { %888 = vmatmul.mubr.f32.vlgmr.msra.gmra.mrb[2].mxu1 %v489_v49 }
 0x3cc   : > { %v581_v51 = vpop.f32.mrb[2].mxu1 }
 0x3cd   : > { %v582_v52 = vadd.f32 %v679_v50, %v581_v51  ;;  %v889_v53 = vpop.f32.mrb[3].mxu1 }
 0x3cf   : > { %586 = vst.msk [vmem:[%s200_s30] sm:$0xff] %vm585_vm2, %v582_v52 }
 0x3d0 PF: > { %p14_p8 = scmp.ge.s32.totalorder %s1210_s22, 4   ;;  %s1377_s12 = smov %s1129_s13 }
 0x3d1   : > { %s1378_s13 = smov %s1133_s14  ;;  %s1379_s14 = smov %s1236_s10 }
 0x3d2   : > { %s1380_s15 = smov %s1210_s22  ;;  %16 = sbr.rel (!%p14_p8) target bundleno = 4 (0x4), region = 82 }
 0x3d9   :  { %606 = vsyncpa [#allocation3], 1 }
 0x3da   :  { %608 = vsyncpa [#allocation3 + $0x1], 1 }
 0x3db   :  { %609 = vsyncpa [#allocation5], 1 }

</bundles_post_ra>
